<compile_context>
chip_gen: v5e
topology: v5e:2x2
jax: 0.10.0
libtpu: 0.0.40
codegen_flags: <defaults>
</compile_context>

<pallas_src>
import jax
import jax.numpy as jnp
from jax.experimental import pallas as pl
from jax.experimental.pallas import tpu as pltpu


LANES = 128


def ve_precond_kernel(weff_ref, beff_ref, x_ref, out_ref):
    """One (batch, spatial-tile) grid step.

    weff_ref : (N*C*C,) f32 SMEM  -- W_eff[n, d, c] flattened row-major
    beff_ref : (N*C,)   f32 SMEM  -- bias_eff[n, d] flattened
    x_ref    : (1, C, R, 128) VMEM tile of the input
    out_ref  : (1, C, R, 128) VMEM tile of D_x
    """
    n = pl.program_id(0)
    C = x_ref.shape[1]
    wbase = n * (C * C)
    bbase = n * C

    # Load each channel slab once; (R, 128) slabs are fully vreg-dense.
    xs = [x_ref[0, c] for c in range(C)]

    for d in range(C):                           # static unroll, C is tiny
        acc = weff_ref[wbase + d * C] * xs[0]    # scalar(SMEM) * vector FMAs
        for c in range(1, C):
            acc = acc + weff_ref[wbase + d * C + c] * xs[c]
        out_ref[0, d] = acc + beff_ref[bbase + d]


def _pick_row_tile(rows, n_batch, channels, *,
                   max_tile_bytes=4 << 20, min_grid_steps=8):
    """Pick the row-tile R such that:
       * R divides `rows`,
       * R is a multiple of 8 or equals `rows` (Mosaic (8,128) rule),
       * tile bytes (channels * R * 128 * 4) <= max_tile_bytes when possible,
       * the grid keeps >= min_grid_steps steps when possible (megacore /
         pipeline depth), then R is maximized."""
    bytes_per_row = channels * LANES * 4
    max_rows = max(1, max_tile_bytes // bytes_per_row)

    candidates = []
    for r in range(1, rows + 1):
        if rows % r:
            continue
        if (r % 8) and r != rows:
            continue
        candidates.append(r)

    capped = [r for r in candidates if r <= max_rows] or candidates
    deep = [r for r in capped if n_batch * (rows // r) >= min_grid_steps]
    pool = deep if deep else capped
    return max(pool)


def ve_precond(x_nchw, sigma, w, b, w_emb, b_emb, *, donate=False,
               max_tile_bytes=4 << 20, min_grid_steps=8):
    """VEPrecond.forward for the synthetic channel-mix network.

    x_nchw: (N, C, H, W), sigma: (N,), w: (C, C), b/w_emb/b_emb: (C,)."""
    x_nchw = x_nchw.astype(jnp.float32)
    sigma = sigma.astype(jnp.float32).reshape(-1)                 # (N,)
    N, C, H, W = x_nchw.shape
    HW = H * W

    # --- Fold VE preconditioning into per-batch effective parameters. -------
    # D_x[n,d] = x[n,d] + sigma[n]*(sum_c w[c,d] x[n,c] + b[d]
    #                               + c_noise[n]*w_emb[d] + b_emb[d])
    #          = sum_c W_eff[n,d,c] x[n,c] + bias_eff[n,d]
    w_f = jnp.asarray(w, jnp.float32)                             # (C, C)
    b_f = jnp.asarray(b, jnp.float32).reshape(C)
    wemb_f = jnp.asarray(w_emb, jnp.float32).reshape(C)
    bemb_f = jnp.asarray(b_emb, jnp.float32).reshape(C)
    c_noise = jnp.log(0.5 * sigma)                                # (N,)

    w_eff = (sigma[:, None, None] * w_f.T[None]
             + jnp.eye(C, dtype=jnp.float32)[None])               # (N, C, C)
    bias_eff = sigma[:, None] * (b_f[None] + bemb_f[None]
                                 + c_noise[:, None] * wemb_f[None])  # (N, C)
    weff_flat = w_eff.reshape(N * C * C)                          # -> SMEM
    beff_flat = bias_eff.reshape(N * C)                           # -> SMEM

    # --- Lane+sublane dense layout: (N, C, rows, 128); HW padded to 128. ----
    hw_pad = ((HW + LANES - 1) // LANES) * LANES
    x_flat = x_nchw.reshape(N, C, HW)
    if hw_pad != HW:
        x_flat = jnp.pad(x_flat, ((0, 0), (0, 0), (0, hw_pad - HW)))
    rows = hw_pad // LANES
    x4 = x_flat.reshape(N, C, rows, LANES)

    r_tile = _pick_row_tile(rows, N, C, max_tile_bytes=max_tile_bytes,
                            min_grid_steps=min_grid_steps)
    grid = (N, rows // r_tile)

    tile_bytes = C * r_tile * LANES * 4
    # in + out, each double-buffered, plus slack; capped for v7x (64 MiB VMEM).
    vmem_limit = int(min(max(32 << 20, 4 * tile_bytes + (1 << 20)), 64 << 20))

    flops = N * hw_pad * C * (2 * C + 1)
    bytes_accessed = 2 * N * C * hw_pad * 4 + (N * C * C + N * C) * 4

    block = (1, C, r_tile, LANES)
    x_spec = pl.BlockSpec(block, lambda n, t, *_: (n, 0, t, 0))
    o_spec = pl.BlockSpec(block, lambda n, t, *_: (n, 0, t, 0))

    out4 = pl.pallas_call(
        ve_precond_kernel,
        out_shape=jax.ShapeDtypeStruct((N, C, rows, LANES), jnp.float32),
        grid_spec=pltpu.PrefetchScalarGridSpec(
            num_scalar_prefetch=2,                    # W_eff, bias_eff -> SMEM
            grid=grid,
            in_specs=[x_spec],                        # x
            out_specs=o_spec,                         # D_x
        ),
        compiler_params=pltpu.CompilerParams(
            dimension_semantics=("parallel", "parallel"),
            vmem_limit_bytes=vmem_limit,
        ),
        cost_estimate=pl.CostEstimate(
            flops=flops, transcendentals=0, bytes_accessed=bytes_accessed),
        # Input index counts the scalar-prefetch operands: (weff, beff, x) -> 2.
        input_output_aliases={2: 0} if donate else {},
    )(weff_flat, beff_flat, x4)

    out = out4.reshape(N, C, hw_pad)[:, :, :HW]
    return out.reshape(N, C, H, W)


def ve_precond_reference(x_nchw, sigma, w, b, w_emb, b_emb):
    """Pure-JAX reference with identical semantics (for correctness check)."""
    x = x_nchw.astype(jnp.float32)
    s = sigma.astype(jnp.float32).reshape(-1, 1, 1, 1)
    c_noise = jnp.log(0.5 * sigma.astype(jnp.float32))            # (N,)
    f = jnp.einsum("nchw,cd->ndhw", x, jnp.asarray(w, jnp.float32))
    emb = c_noise[:, None] * w_emb + b_emb                        # (N, C)
    f = f + b.reshape(1, -1, 1, 1) + emb[:, :, None, None]
    return x + s * f


if __name__ == "__main__":
    key = jax.random.PRNGKey(0)
    kx, ks, kw, kb, kwe, kbe = jax.random.split(key, 6)

    N, C, H, W = 2, 4, 16, 16
    x = jax.random.normal(kx, (N, C, H, W), dtype=jnp.float32)
    # sigmas inside [sigma_min, sigma_max]
    sigma = jax.random.uniform(ks, (N,), minval=0.02, maxval=100.0,
                               dtype=jnp.float32)

    # Deterministic synthetic network parameters.
    # TODO(synk): the generic `network` module has no Pallas equivalent; it is
    # synthesized as a fixed channel-mix + noise-embedding stand-in here.
    w = 0.1 * jax.random.normal(kw, (C, C), dtype=jnp.float32)
    b = 0.1 * jax.random.normal(kb, (C,), dtype=jnp.float32)
    w_emb = 0.1 * jax.random.normal(kwe, (C,), dtype=jnp.float32)
    b_emb = 0.1 * jax.random.normal(kbe, (C,), dtype=jnp.float32)

    d_x = ve_precond(x, sigma, w, b, w_emb, b_emb)
    jax.block_until_ready(d_x)

    ref = ve_precond_reference(x, sigma, w, b, w_emb, b_emb)
    assert d_x.shape == (N, C, H, W)
    assert jnp.allclose(d_x, ref, atol=1e-3, rtol=1e-3), \
        float(jnp.max(jnp.abs(d_x - ref)))

    print("KERNEL_OK")
</pallas_src>

<mosaic_0001>
module attributes {stable_mosaic.version = 11 : i64} {
  func.func @ve_precond_kernel(%arg0: i32, %arg1: i32, %arg2: memref<32xf32, #tpu.memory_space<smem>>, %arg3: memref<8xf32, #tpu.memory_space<smem>>, %arg4: memref<1x4x2x128xf32, #tpu.memory_space<vmem>>, %arg5: memref<1x4x2x128xf32, #tpu.memory_space<vmem>>) attributes {dimension_semantics = [#tpu.dimension_semantics<parallel>, #tpu.dimension_semantics<parallel>], iteration_bounds = array<i64: 2, 1>, scalar_prefetch = 2 : i64, scratch_operands = 0 : i64, tpu.core_type = #tpu.core_type<tc>, window_params = [{transform_indices = @transform_0, window_bounds = array<i64: 1, 4, 2, 128>}, {transform_indices = @transform_1, window_bounds = array<i64: 1, 4, 2, 128>}]} {
    %c16_i32 = arith.constant 16 : i32
    %0 = arith.muli %arg0, %c16_i32 : i32
    %c4_i32 = arith.constant 4 : i32
    %1 = arith.muli %arg0, %c4_i32 : i32
    %c0 = arith.constant 0 : index
    %c0_0 = arith.constant 0 : index
    %c0_1 = arith.constant 0 : index
    %c0_2 = arith.constant 0 : index
    %2 = vector.load %arg4[%c0, %c0_0, %c0_1, %c0_2] : memref<1x4x2x128xf32, #tpu.memory_space<vmem>>, vector<1x1x2x128xf32>
    %3 = vector.shape_cast %2 : vector<1x1x2x128xf32> to vector<2x128xf32>
    %c0_3 = arith.constant 0 : index
    %c1 = arith.constant 1 : index
    %c0_4 = arith.constant 0 : index
    %c0_5 = arith.constant 0 : index
    %4 = vector.load %arg4[%c0_3, %c1, %c0_4, %c0_5] : memref<1x4x2x128xf32, #tpu.memory_space<vmem>>, vector<1x1x2x128xf32>
    %5 = vector.shape_cast %4 : vector<1x1x2x128xf32> to vector<2x128xf32>
    %c0_6 = arith.constant 0 : index
    %c2 = arith.constant 2 : index
    %c0_7 = arith.constant 0 : index
    %c0_8 = arith.constant 0 : index
    %6 = vector.load %arg4[%c0_6, %c2, %c0_7, %c0_8] : memref<1x4x2x128xf32, #tpu.memory_space<vmem>>, vector<1x1x2x128xf32>
    %7 = vector.shape_cast %6 : vector<1x1x2x128xf32> to vector<2x128xf32>
    %c0_9 = arith.constant 0 : index
    %c3 = arith.constant 3 : index
    %c0_10 = arith.constant 0 : index
    %c0_11 = arith.constant 0 : index
    %8 = vector.load %arg4[%c0_9, %c3, %c0_10, %c0_11] : memref<1x4x2x128xf32, #tpu.memory_space<vmem>>, vector<1x1x2x128xf32>
    %9 = vector.shape_cast %8 : vector<1x1x2x128xf32> to vector<2x128xf32>
    %c0_i32 = arith.constant 0 : i32
    %10 = arith.addi %0, %c0_i32 : i32
    %11 = arith.index_cast %10 : i32 to index
    %12 = memref.load %arg2[%11] : memref<32xf32, #tpu.memory_space<smem>>
    %13 = vector.broadcast %12 : f32 to vector<2x128xf32>
    %14 = arith.mulf %13, %3 : vector<2x128xf32>
    %c0_i32_12 = arith.constant 0 : i32
    %15 = arith.addi %0, %c0_i32_12 : i32
    %c1_i32 = arith.constant 1 : i32
    %16 = arith.addi %15, %c1_i32 : i32
    %17 = arith.index_cast %16 : i32 to index
    %18 = memref.load %arg2[%17] : memref<32xf32, #tpu.memory_space<smem>>
    %19 = vector.broadcast %18 : f32 to vector<2x128xf32>
    %20 = arith.mulf %19, %5 : vector<2x128xf32>
    %21 = arith.addf %14, %20 : vector<2x128xf32>
    %c0_i32_13 = arith.constant 0 : i32
    %22 = arith.addi %0, %c0_i32_13 : i32
    %c2_i32 = arith.constant 2 : i32
    %23 = arith.addi %22, %c2_i32 : i32
    %24 = arith.index_cast %23 : i32 to index
    %25 = memref.load %arg2[%24] : memref<32xf32, #tpu.memory_space<smem>>
    %26 = vector.broadcast %25 : f32 to vector<2x128xf32>
    %27 = arith.mulf %26, %7 : vector<2x128xf32>
    %28 = arith.addf %21, %27 : vector<2x128xf32>
    %c0_i32_14 = arith.constant 0 : i32
    %29 = arith.addi %0, %c0_i32_14 : i32
    %c3_i32 = arith.constant 3 : i32
    %30 = arith.addi %29, %c3_i32 : i32
    %31 = arith.index_cast %30 : i32 to index
    %32 = memref.load %arg2[%31] : memref<32xf32, #tpu.memory_space<smem>>
    %33 = vector.broadcast %32 : f32 to vector<2x128xf32>
    %34 = arith.mulf %33, %9 : vector<2x128xf32>
    %35 = arith.addf %28, %34 : vector<2x128xf32>
    %c0_i32_15 = arith.constant 0 : i32
    %36 = arith.addi %1, %c0_i32_15 : i32
    %37 = arith.index_cast %36 : i32 to index
    %38 = memref.load %arg3[%37] : memref<8xf32, #tpu.memory_space<smem>>
    %39 = vector.broadcast %38 : f32 to vector<2x128xf32>
    %40 = arith.addf %35, %39 : vector<2x128xf32>
    %c0_16 = arith.constant 0 : index
    %c0_17 = arith.constant 0 : index
    %c0_18 = arith.constant 0 : index
    %c0_19 = arith.constant 0 : index
    %41 = vector.load %arg5[%c0_16, %c0_17, %c0_18, %c0_19] : memref<1x4x2x128xf32, #tpu.memory_space<vmem>>, vector<1x1x2x128xf32>
    %42 = vector.shape_cast %41 : vector<1x1x2x128xf32> to vector<2x128xf32>
    %43 = vector.shape_cast %40 : vector<2x128xf32> to vector<1x1x2x128xf32>
    tpu.vector_store %arg5[%c0_16, %c0_17, %c0_18, %c0_19], %43 {strides = array<i32>} : memref<1x4x2x128xf32, #tpu.memory_space<vmem>>, vector<1x1x2x128xf32>,
    %c4_i32_20 = arith.constant 4 : i32
    %44 = arith.addi %0, %c4_i32_20 : i32
    %45 = arith.index_cast %44 : i32 to index
    %46 = memref.load %arg2[%45] : memref<32xf32, #tpu.memory_space<smem>>
    %47 = vector.broadcast %46 : f32 to vector<2x128xf32>
    %48 = arith.mulf %47, %3 : vector<2x128xf32>
    %c4_i32_21 = arith.constant 4 : i32
    %49 = arith.addi %0, %c4_i32_21 : i32
    %c1_i32_22 = arith.constant 1 : i32
    %50 = arith.addi %49, %c1_i32_22 : i32
    %51 = arith.index_cast %50 : i32 to index
    %52 = memref.load %arg2[%51] : memref<32xf32, #tpu.memory_space<smem>>
    %53 = vector.broadcast %52 : f32 to vector<2x128xf32>
    %54 = arith.mulf %53, %5 : vector<2x128xf32>
    %55 = arith.addf %48, %54 : vector<2x128xf32>
    %c4_i32_23 = arith.constant 4 : i32
    %56 = arith.addi %0, %c4_i32_23 : i32
    %c2_i32_24 = arith.constant 2 : i32
    %57 = arith.addi %56, %c2_i32_24 : i32
    %58 = arith.index_cast %57 : i32 to index
    %59 = memref.load %arg2[%58] : memref<32xf32, #tpu.memory_space<smem>>
    %60 = vector.broadcast %59 : f32 to vector<2x128xf32>
    %61 = arith.mulf %60, %7 : vector<2x128xf32>
    %62 = arith.addf %55, %61 : vector<2x128xf32>
    %c4_i32_25 = arith.constant 4 : i32
    %63 = arith.addi %0, %c4_i32_25 : i32
    %c3_i32_26 = arith.constant 3 : i32
    %64 = arith.addi %63, %c3_i32_26 : i32
    %65 = arith.index_cast %64 : i32 to index
    %66 = memref.load %arg2[%65] : memref<32xf32, #tpu.memory_space<smem>>
    %67 = vector.broadcast %66 : f32 to vector<2x128xf32>
    %68 = arith.mulf %67, %9 : vector<2x128xf32>
    %69 = arith.addf %62, %68 : vector<2x128xf32>
    %c1_i32_27 = arith.constant 1 : i32
    %70 = arith.addi %1, %c1_i32_27 : i32
    %71 = arith.index_cast %70 : i32 to index
    %72 = memref.load %arg3[%71] : memref<8xf32, #tpu.memory_space<smem>>
    %73 = vector.broadcast %72 : f32 to vector<2x128xf32>
    %74 = arith.addf %69, %73 : vector<2x128xf32>
    %c0_28 = arith.constant 0 : index
    %c1_29 = arith.constant 1 : index
    %c0_30 = arith.constant 0 : index
    %c0_31 = arith.constant 0 : index
    %75 = vector.load %arg5[%c0_28, %c1_29, %c0_30, %c0_31] : memref<1x4x2x128xf32, #tpu.memory_space<vmem>>, vector<1x1x2x128xf32>
    %76 = vector.shape_cast %75 : vector<1x1x2x128xf32> to vector<2x128xf32>
    %77 = vector.shape_cast %74 : vector<2x128xf32> to vector<1x1x2x128xf32>
    tpu.vector_store %arg5[%c0_28, %c1_29, %c0_30, %c0_31], %77 {strides = array<i32>} : memref<1x4x2x128xf32, #tpu.memory_space<vmem>>, vector<1x1x2x128xf32>,
    %c8_i32 = arith.constant 8 : i32
    %78 = arith.addi %0, %c8_i32 : i32
    %79 = arith.index_cast %78 : i32 to index
    %80 = memref.load %arg2[%79] : memref<32xf32, #tpu.memory_space<smem>>
    %81 = vector.broadcast %80 : f32 to vector<2x128xf32>
    %82 = arith.mulf %81, %3 : vector<2x128xf32>
    %c8_i32_32 = arith.constant 8 : i32
    %83 = arith.addi %0, %c8_i32_32 : i32
    %c1_i32_33 = arith.constant 1 : i32
    %84 = arith.addi %83, %c1_i32_33 : i32
    %85 = arith.index_cast %84 : i32 to index
    %86 = memref.load %arg2[%85] : memref<32xf32, #tpu.memory_space<smem>>
    %87 = vector.broadcast %86 : f32 to vector<2x128xf32>
    %88 = arith.mulf %87, %5 : vector<2x128xf32>
    %89 = arith.addf %82, %88 : vector<2x128xf32>
    %c8_i32_34 = arith.constant 8 : i32
    %90 = arith.addi %0, %c8_i32_34 : i32
    %c2_i32_35 = arith.constant 2 : i32
    %91 = arith.addi %90, %c2_i32_35 : i32
    %92 = arith.index_cast %91 : i32 to index
    %93 = memref.load %arg2[%92] : memref<32xf32, #tpu.memory_space<smem>>
    %94 = vector.broadcast %93 : f32 to vector<2x128xf32>
    %95 = arith.mulf %94, %7 : vector<2x128xf32>
    %96 = arith.addf %89, %95 : vector<2x128xf32>
    %c8_i32_36 = arith.constant 8 : i32
    %97 = arith.addi %0, %c8_i32_36 : i32
    %c3_i32_37 = arith.constant 3 : i32
    %98 = arith.addi %97, %c3_i32_37 : i32
    %99 = arith.index_cast %98 : i32 to index
    %100 = memref.load %arg2[%99] : memref<32xf32, #tpu.memory_space<smem>>
    %101 = vector.broadcast %100 : f32 to vector<2x128xf32>
    %102 = arith.mulf %101, %9 : vector<2x128xf32>
    %103 = arith.addf %96, %102 : vector<2x128xf32>
    %c2_i32_38 = arith.constant 2 : i32
    %104 = arith.addi %1, %c2_i32_38 : i32
    %105 = arith.index_cast %104 : i32 to index
    %106 = memref.load %arg3[%105] : memref<8xf32, #tpu.memory_space<smem>>
    %107 = vector.broadcast %106 : f32 to vector<2x128xf32>
    %108 = arith.addf %103, %107 : vector<2x128xf32>
    %c0_39 = arith.constant 0 : index
    %c2_40 = arith.constant 2 : index
    %c0_41 = arith.constant 0 : index
    %c0_42 = arith.constant 0 : index
    %109 = vector.load %arg5[%c0_39, %c2_40, %c0_41, %c0_42] : memref<1x4x2x128xf32, #tpu.memory_space<vmem>>, vector<1x1x2x128xf32>
    %110 = vector.shape_cast %109 : vector<1x1x2x128xf32> to vector<2x128xf32>
    %111 = vector.shape_cast %108 : vector<2x128xf32> to vector<1x1x2x128xf32>
    tpu.vector_store %arg5[%c0_39, %c2_40, %c0_41, %c0_42], %111 {strides = array<i32>} : memref<1x4x2x128xf32, #tpu.memory_space<vmem>>, vector<1x1x2x128xf32>,
    %c12_i32 = arith.constant 12 : i32
    %112 = arith.addi %0, %c12_i32 : i32
    %113 = arith.index_cast %112 : i32 to index
    %114 = memref.load %arg2[%113] : memref<32xf32, #tpu.memory_space<smem>>
    %115 = vector.broadcast %114 : f32 to vector<2x128xf32>
    %116 = arith.mulf %115, %3 : vector<2x128xf32>
    %c12_i32_43 = arith.constant 12 : i32
    %117 = arith.addi %0, %c12_i32_43 : i32
    %c1_i32_44 = arith.constant 1 : i32
    %118 = arith.addi %117, %c1_i32_44 : i32
    %119 = arith.index_cast %118 : i32 to index
    %120 = memref.load %arg2[%119] : memref<32xf32, #tpu.memory_space<smem>>
    %121 = vector.broadcast %120 : f32 to vector<2x128xf32>
    %122 = arith.mulf %121, %5 : vector<2x128xf32>
    %123 = arith.addf %116, %122 : vector<2x128xf32>
    %c12_i32_45 = arith.constant 12 : i32
    %124 = arith.addi %0, %c12_i32_45 : i32
    %c2_i32_46 = arith.constant 2 : i32
    %125 = arith.addi %124, %c2_i32_46 : i32
    %126 = arith.index_cast %125 : i32 to index
    %127 = memref.load %arg2[%126] : memref<32xf32, #tpu.memory_space<smem>>
    %128 = vector.broadcast %127 : f32 to vector<2x128xf32>
    %129 = arith.mulf %128, %7 : vector<2x128xf32>
    %130 = arith.addf %123, %129 : vector<2x128xf32>
    %c12_i32_47 = arith.constant 12 : i32
    %131 = arith.addi %0, %c12_i32_47 : i32
    %c3_i32_48 = arith.constant 3 : i32
    %132 = arith.addi %131, %c3_i32_48 : i32
    %133 = arith.index_cast %132 : i32 to index
    %134 = memref.load %arg2[%133] : memref<32xf32, #tpu.memory_space<smem>>
    %135 = vector.broadcast %134 : f32 to vector<2x128xf32>
    %136 = arith.mulf %135, %9 : vector<2x128xf32>
    %137 = arith.addf %130, %136 : vector<2x128xf32>
    %c3_i32_49 = arith.constant 3 : i32
    %138 = arith.addi %1, %c3_i32_49 : i32
    %139 = arith.index_cast %138 : i32 to index
    %140 = memref.load %arg3[%139] : memref<8xf32, #tpu.memory_space<smem>>
    %141 = vector.broadcast %140 : f32 to vector<2x128xf32>
    %142 = arith.addf %137, %141 : vector<2x128xf32>
    %c0_50 = arith.constant 0 : index
    %c3_51 = arith.constant 3 : index
    %c0_52 = arith.constant 0 : index
    %c0_53 = arith.constant 0 : index
    %143 = vector.load %arg5[%c0_50, %c3_51, %c0_52, %c0_53] : memref<1x4x2x128xf32, #tpu.memory_space<vmem>>, vector<1x1x2x128xf32>
    %144 = vector.shape_cast %143 : vector<1x1x2x128xf32> to vector<2x128xf32>
    %145 = vector.shape_cast %142 : vector<2x128xf32> to vector<1x1x2x128xf32>
    tpu.vector_store %arg5[%c0_50, %c3_51, %c0_52, %c0_53], %145 {strides = array<i32>} : memref<1x4x2x128xf32, #tpu.memory_space<vmem>>, vector<1x1x2x128xf32>,
    return
  }
  func.func @transform_0(%arg0: i32, %arg1: i32, %arg2: memref<32xf32, #tpu.memory_space<smem>>, %arg3: memref<8xf32, #tpu.memory_space<smem>>) -> (i32, i32, i32, i32) {
    %c0_i32 = arith.constant 0 : i32
    %c0_i32_0 = arith.constant 0 : i32
    %c0_i32_1 = arith.constant 0 : i32
    return %arg0, %c0_i32, %arg1, %c0_i32_0 : i32, i32, i32, i32
  }
  func.func @transform_1(%arg0: i32, %arg1: i32, %arg2: memref<32xf32, #tpu.memory_space<smem>>, %arg3: memref<8xf32, #tpu.memory_space<smem>>) -> (i32, i32, i32, i32) {
    %c0_i32 = arith.constant 0 : i32
    %c0_i32_0 = arith.constant 0 : i32
    %c0_i32_1 = arith.constant 0 : i32
    return %arg0, %c0_i32, %arg1, %c0_i32_0 : i32, i32, i32, i32
  }
}

</mosaic_0001>

<bundles_post_ra>
// kernel: tpu_custom_call.1
= control target key start
LH: loop header
LB: loop body
LE: loop exit
PB: predicated region body
PF: predicated region fallthrough
CT: control target
= control target key end

     0   :  { %s610_s18 = smov [#allocation3]   ;;  %s611_s19 = smov [#allocation4]   ;;  %s841_s0 = inlined_call_operand.hbm [shape: f32[32], index: 0, kind: input, shape index: {}]   ;;  %s842_s2 = inlined_call_operand.hbm [shape: f32[2,4,2,128], index: 2, kind: input, shape index: {}]   ;;  %s843_s3 = inlined_call_operand.hbm [shape: f32[2,4,2,128], index: 3, kind: output, shape index: {}]   ;;  %s844_s1 = inlined_call_operand.hbm [shape: f32[8], index: 1, kind: input, shape index: {}]  }
   0x1   :  { %s9_s14 = sshll.u32 %s841_s0, 4  ;;  %s14_s17 = sshll.u32 %s844_s1, 4  ;;  %s10_s14 = int_to_ptr.hbm [resolvable:$true] %s9_s14  ;;  %s15_s17 = int_to_ptr.hbm [resolvable:$true] %s14_s17 }
   0x2   :  { %12 = dma.hbm_to_smem %s10_s14, 16, %s610_s18, [#allocation2] }
   0x3   :  { %17 = dma.hbm_to_smem %s15_s17, 16, %s611_s19, [#allocation2] }
   0x4   :  { %576 = dma.done.wait [#allocation2], 32 }
   0x5   :  { %577 = vsyncadd [#allocation2], 4294967264 }
   0x6   :  { %20 = sfence }
   0x7   :  { %21 = vsyncpa [#allocation6], 0 }
   0x8   :  { %23 = vsyncpa [#allocation6 + $0x1], 0 }
   0x9   :  { %24 = vsyncpa [#allocation7], 0 }
   0xa   :  { %26 = vsyncpa [#allocation7 + $0x1], 0  ;;  %s642_s20 = smov 0   ;;  %s644_s0 = smov 0  }
   0xb   :  { %s646_s21 = smov 0   ;;  %s648_s1 = smov 0  }
   0xc   :  { %s650_s22 = smov 0   ;;  %s652_s23 = smov 0  }
   0xd LB: > { %s377_s24 = sadd.s32 4294967295, %s608_s23   ;;  %s378_s25 = sadd.s32 4294967294, %s608_s23   ;;  %s608_s23 = sphi %s652_s23, %s32_s23   ;;  %s604_s22 = sphi %s650_s22, %s853_s22   ;;  %s600_s1 = sphi %s648_s1, %s852_s1   ;;  %s596_s21 = sphi %s646_s21, %s851_s21   ;;  %s592_s0 = sphi %s644_s0, %s850_s0   ;;  %s588_s20 = sphi %s642_s20, %s849_s20  }
   0xe   : > { %s44_s26 = sadd.s32 1, %s604_s22  ;;  %s53_s27 = sadd.s32 1, %s596_s21 }
   0xf   : > { %p46_p0 = scmp.ge.s32.totalorder %s44_s26, 2  ;;  %p60_p1 = scmp.ne.s32.totalorder %s596_s21, %s592_s0 }
  0x10   : > { %p61_p2 = scmp.eq.s32.totalorder %s608_s23, 0  ;;  %p66_p3 = scmp.ne.s32.totalorder %s592_s0, %s588_s20 }
  0x11   : > { %s855_s26 = smov (%p46_p0, %s44_s26), 0  ;;  %p67_p5 = scmp.eq.s32.totalorder %s377_s24, 0 }
  0x12   : > { %p683_p4 = por %p61_p2, %p60_p1  ;;  %s48_s29 = ssub.s32 %s604_s22, %s855_s26 }
  0x13   : > { %p92_p6 = scmp.eq.s32.totalorder %s377_s24, 1  ;;  %p51_p7 = scmp.eq.s32.totalorder %s48_s29, 0 }
  0x14   : > { %p689_p8 = por %p67_p5, %p66_p3  ;;  %p98_p10 = scmp.eq.s32.totalorder %s378_s25, 1 }
  0x15   : > { %p693_p9 = por %p92_p6, %p60_p1  ;;  %p380_p12 = scmp.ge.s32.totalorder %s608_s23, 2 }
  0x16   : > { %s698_s5 = scalar_select %p51_p7, %s596_s21, %s53_s27  }
  0x17   : > { %p700_p11 = por %p98_p10, %p66_p3  ;;  %p414_p13 = scmp.lt.s32.totalorder %s608_s23, 2 }
  0x18   : > { %s118_s7 = sand.u32 1, %s596_s21   ;;  %s400_s9 = sshll.u32 %s604_s22, 3 }
  0x19   : > { %s381_s8 = sshll.u32 %s118_s7, 3  ;;  %s128_s12 = scalar_lea.hbm %s842_s2, %s400_s9 }
  0x1a   : > { %s122_s13 = scalar_lea.vmem [#allocation5], %s381_s8  ;;  %s129_s15 = sshll.u32 %s128_s12, 4  ;;  %s130_s15 = int_to_ptr.hbm [resolvable:$true] %s129_s15 }
  0x1b   : > { %s131_s14 = sshll.u32 %s122_s13, 4  ;;  %p407_p0 = pnand %p414_p13, %p683_p4  ;;  %s132_s14 = int_to_ptr.vmem [resolvable:$true] %s131_s14 }
  0x1c   : > { %p384_p1 = scmp.ge.s32.totalorder %s608_s23, 1  ;;  %s119_s16 = scalar_lea.sflag [#allocation6], %s118_s7 }
  0x1d   : > { %s612_s17 = smov 32   ;;  %s613_s18 = smov 2  }
  0x1e   : > { %409 = dma.hbm_to_vmem [thread:$0]  (!%p407_p0), %s130_s15, 128, %s132_s14, %s119_s16, %s612_s17, %s612_s17, %s613_s18  }
  0x1f   : > { %p139_p2 = scmp.lt.s32.totalorder %s608_s23, 3 }
  0x21   : > { %p140_p3 = pnand %p384_p1, %p139_p2 }
  0x22   : > { %s716_s19 = sand.u32 (!%p140_p3), 1, %s592_s0  }
  0x23   : > { %143 = sbr.rel (%p140_p3) target bundleno = 79 (0x4f), region = 24  ;;  %s385_s24 = sshll.u32 (!%p140_p3), %s716_s19, 3 }
  0x24   : > { %s146_s25 = scalar_lea.sflag (!%p140_p3), [#allocation6], %s716_s19  ;;  %s149_s27 = scalar_lea.vmem (!%p140_p3), [#allocation5], %s385_s24 }
  0x28   : > { %579 = dma.done.wait (%p689_p8), %s146_s25, 128  }
  0x29   : > { %581 = vsyncadd (%p689_p8), %s146_s25, 4294967168  ;;  %s727_s28 = sshll.u32 %s600_s1, 4  ;;  %s734_s11 = sshll.u32 %s600_s1, 2  ;;  %v737_v0 = vld [vmem:[%s149_s27] sm:$0x3] }
  0x2a   : > { %s178_s29 = sld [smem:[#allocation3 + %s727_s28]]  ;;  %s181_s7 = sadd.s32 1, %s727_s28  ;;  %v739_v1 = vld [vmem:[%s149_s27 + $0x2] sm:$0x3]  ;;  %v744_v3 = vld [vmem:[%s149_s27 + $0x4] sm:$0x3] }
  0x2b   : > { %s186_s8 = sadd.s32 2, %s727_s28  ;;  %s182_s9 = sld [smem:[#allocation3 + %s181_s7]]  ;;  %v748_v5 = vld [vmem:[%s149_s27 + $0x6] sm:$0x3] }
  0x2c   : > { %s191_s10 = sadd.s32 3, %s727_s28  ;;  %s187_s30 = sld [smem:[#allocation3 + %s186_s8]] }
  0x2d   : > { %s192_s12 = sld [smem:[#allocation3 + %s191_s10]]  ;;  %s200_s13 = sadd.s32 4, %s727_s28 }
  0x2e   : > { %s742_s14 = sld [smem:[#allocation4 + %s734_s11]]  ;;  %s204_s16 = sadd.s32 5, %s727_s28 }
  0x2f   : > { %s201_s15 = sld [smem:[#allocation3 + %s200_s13]]  ;;  %s209_s18 = sadd.s32 6, %s727_s28 }
  0x30   : > { %v179_v2 = vstv %s178_s29  ;;  %s205_s17 = sld [smem:[#allocation3 + %s204_s16]]  ;;  %s214_s29 = sadd.s32 7, %s727_s28 }
  0x31   : > { %v180_v4 = vmul.f32 %v179_v2, %v737_v0  ;;  %v183_v6 = vstv %s182_s9  ;;  %s210_s25 = sld [smem:[#allocation3 + %s209_s18]]  ;;  %s219_s8 = sadd.s32 1, %s734_s11 }
  0x32   : > { %v184_v7 = vmul.f32 %v739_v1, %v183_v6  ;;  %v188_v8 = vstv %s187_s30  ;;  %s215_s7 = sld [smem:[#allocation3 + %s214_s29]]  ;;  %s225_s9 = sadd.s32 8, %s727_s28 }
  0x33   : > { %v189_v9 = vmul.f32 %v744_v3, %v188_v8  ;;  %v193_v10 = vstv %s192_s12  ;;  %s756_s27 = sld [smem:[#allocation4 + %s219_s8]]  ;;  %s229_s30 = sadd.s32 9, %s727_s28 }
  0x34   : > { %v185_v11 = vadd.f32 %v184_v7, %v180_v4  ;;  %v194_v12 = vmul.f32 %v748_v5, %v193_v10  ;;  %s759_s10 = sld [smem:[#allocation3 + %s225_s9]]  ;;  %s234_s16 = sadd.s32 10, %s727_s28  ;;  %v197_v15 = vstv %s742_s14 }
  0x35   : > { %v202_v14 = vstv %s201_s15  ;;  %s762_s13 = sld [smem:[#allocation3 + %s229_s30]]  ;;  %s239_s18 = sadd.s32 11, %s727_s28 }
  0x36   : > { %v190_v13 = vadd.f32 %v189_v9, %v185_v11  ;;  %v203_v16 = vmul.f32 %v202_v14, %v737_v0  ;;  %v206_v17 = vstv %s205_s17  ;;  %s767_s12 = sld [smem:[#allocation3 + %s234_s16]]  ;;  %s244_s29 = sadd.s32 2, %s734_s11 }
  0x37   : > { %v207_v19 = vmul.f32 %v739_v1, %v206_v17  ;;  %v211_v20 = vstv %s210_s25  ;;  %s240_s15 = sld [smem:[#allocation3 + %s239_s18]]  ;;  %s250_s17 = sadd.s32 12, %s727_s28 }
  0x38   : > { %v195_v18 = vadd.f32 %v194_v12, %v190_v13  ;;  %v212_v21 = vmul.f32 %v744_v3, %v211_v20  ;;  %v216_v22 = vstv %s215_s7  ;;  %s773_s14 = sld [smem:[#allocation4 + %s244_s29]]  ;;  %s254_s9 = sadd.s32 13, %s727_s28 }
  0x39   : > { %v208_v24 = vadd.f32 %v207_v19, %v203_v16  ;;  %v217_v25 = vmul.f32 %v748_v5, %v216_v22  ;;  %s251_s8 = sld [smem:[#allocation3 + %s250_s17]]  ;;  %s259_s30 = sadd.s32 14, %s727_s28  ;;  %v221_v30 = vstv %s756_s27 }
  0x3a   : > { %v198_v23 = vadd.f32 %v197_v15, %v195_v18  ;;  %v227_v26 = vstv %s759_s10  ;;  %s255_s25 = sld [smem:[#allocation3 + %s254_s9]]  ;;  %s782_s16 = scalar_lea.vmem [#allocation8], %s385_s24 }
  0x3b   : > { %v213_v27 = vadd.f32 %v212_v21, %v208_v24  ;;  %v228_v28 = vmul.f32 %v227_v26, %v737_v0  ;;  %v231_v29 = vstv %s762_s13  ;;  %s260_s7 = sld [smem:[#allocation3 + %s259_s30]]  ;;  %s264_s18 = sadd.s32 15, %s727_s28 }
  0x3c   : > { %199 = vst [vmem:[%s782_s16] sm:$0x3] %v198_v23  ;;  %v232_v31 = vmul.f32 %v739_v1, %v231_v29  ;;  %v236_v32 = vstv %s767_s12  ;;  %s265_s10 = sld [smem:[#allocation3 + %s264_s18]]  ;;  %s269_s29 = sadd.s32 3, %s734_s11 }
  0x3d   : > { %v218_v33 = vadd.f32 %v217_v25, %v213_v27  ;;  %v237_v34 = vmul.f32 %v744_v3, %v236_v32  ;;  %v241_v35 = vstv %s240_s15  ;;  %s270_s24 = sld [smem:[#allocation4 + %s269_s29]]  ;;  %s401_s28 = sshll.u32 %s600_s1, 3 }
  0x3e   : > { %v233_v36 = vadd.f32 %v232_v31, %v228_v28  ;;  %v242_v37 = vmul.f32 %v748_v5, %v241_v35  ;;  %v246_v43 = vstv %s773_s14  ;;  %s288_s13 = scalar_lea.hbm %s843_s3, %s401_s28  ;;  %s289_s12 = sshll.u32 %s782_s16, 4  ;;  %s290_s12 = int_to_ptr.vmem [resolvable:$true] %s289_s12 }
  0x3f   : > { %v222_v38 = vadd.f32 %v221_v30, %v218_v33  ;;  %v252_v39 = vstv %s251_s8  ;;  %s291_s1 = sshll.u32 %s288_s13, 4  ;;  %s276_s15 = scalar_lea.sflag [#allocation7], %s716_s19  ;;  %s292_s1 = int_to_ptr.hbm [resolvable:$true] %s291_s1 }
  0x40   : > { %v238_v40 = vadd.f32 %v237_v34, %v233_v36  ;;  %v253_v41 = vmul.f32 %v252_v39, %v737_v0  ;;  %v256_v42 = vstv %s255_s25  ;;  %s538_s14 = sshra.s32 %s292_s1, 4  ;;  %s544_s25 = scalar_lea.hbm %s843_s3, 16  ;;  %s539_s14 = int_to_ptr.hbm [resolvable:$true] %s538_s14 }
  0x41   : > { %392 = vst [vmem:[%s782_s16 + $0x2] sm:$0x3] %v222_v38  ;;  %v257_v44 = vmul.f32 %v739_v1, %v256_v42  ;;  %v261_v45 = vstv %s260_s7  ;;  %s540_s17 = scalar_lea.hbm %s539_s14, 8  ;;  %p545_p7 = scmp.lt.s32.totalorder %s539_s14, %s843_s3 }
  0x42   : > { %v243_v46 = vadd.f32 %v242_v37, %v238_v40  ;;  %v262_v47 = vmul.f32 %v744_v3, %v261_v45  ;;  %v266_v48 = vstv %s265_s10  ;;  %p541_p4 = scmp.ne.s32.totalorder %s539_s14, %s540_s17  ;;  %p546_p8 = scmp.lt.s32.totalorder %s544_s25, %s540_s17 }
  0x43   : > { %v258_v49 = vadd.f32 %v257_v44, %v253_v41  ;;  %v267_v50 = vmul.f32 %v748_v5, %v266_v48  ;;  %v271_v53 = vstv %s270_s24 }
  0x44   : > { %v247_v51 = vadd.f32 %v246_v43, %v243_v46  ;;  %p542_p5 = pnand %p541_p4, %p693_p9  ;;  %p547_p10 = por %p546_p8, %p545_p7 }
  0x45   : > { %v263_v52 = vadd.f32 %v262_v47, %v258_v49 }
  0x46   : > { %393 = vst [vmem:[%s782_s16 + $0x4] sm:$0x3] %v247_v51  ;;  %p543_p6 = pneg %p542_p5 }
  0x47   : > { %v268_v54 = vadd.f32 %v267_v50, %v263_v52 }
  0x48   : > { %p548_p13 = pnand %p547_p10, %p543_p6 }
  0x49   : > { %v272_v55 = vadd.f32 %v271_v53, %v268_v54 }
  0x4b   : > { %394 = vst [vmem:[%s782_s16 + $0x6] sm:$0x3] %v272_v55 }
  0x4c   : > { %551 = shalt.err (!%p548_p13)
}
  0x4d   : > { %s614_s19 = smov 32   ;;  %s615_s16 = smov 2  }
  0x4e   : > { %404 = dma.vmem_to_hbm [thread:$0]  (%p693_p9), %s290_s12, 128, %s292_s1, %s276_s15, %s614_s19, %s614_s19, %s615_s16  }
  0x4f PF: > { %s306_s18 = sand.u32 1, %s588_s20   ;;  %p411_p0 = pnand %p380_p12, %p700_p11 }
  0x50   : > { %s307_s10 = scalar_lea.sflag [#allocation7], %s306_s18 }
  0x51   : > { %p412_p1 = pneg %p411_p0 }
  0x53   : > { %583 = dma.done.wait (%p412_p1), %s307_s10, 128  }
  0x54   : > { %585 = vsyncadd (%p412_p1), %s307_s10, 4294967168  ;;  %s32_s23 = sadd.s32 1, %s608_s23   ;;  %s849_s20 = smov %s592_s0 }
  0x55   : > { %p29_p2 = scmp.ge.s32.totalorder %s32_s23, 4   ;;  %s850_s0 = smov %s596_s21 }
  0x56   : > { %s851_s21 = smov %s698_s5  ;;  %s852_s1 = smov %s604_s22 }
  0x57   : > { %s853_s22 = smov %s855_s26  ;;  %31 = sbr.rel (!%p29_p2) target bundleno = 13 (0xd), region = 75 }
  0x5c   :  { %313 = vsyncpa [#allocation6], 1 }
  0x5d   :  { %315 = vsyncpa [#allocation6 + $0x1], 1 }
  0x5e   :  { %316 = vsyncpa [#allocation7], 1 }
  0x5f   :  { %318 = vsyncpa [#allocation7 + $0x1], 1 }

</bundles_post_ra>
